<compile_context>
chip_gen: v5e
topology: v5e:2x2
jax: 0.10.0
libtpu: 0.0.40
codegen_flags: <defaults>
</compile_context>

<pallas_src>
import functools

import jax
import jax.numpy as jnp
from jax import lax
from jax.experimental import pallas as pl
from jax.experimental.pallas import tpu as pltpu


def _round_up(x, m):
    return ((x + m - 1) // m) * m


def _choose_tiling(B, batch_tile):
    """Pick (TB, Bp).

    TB is a multiple of 8 so the packed (TB, S*D) output block satisfies the
    (8, 128) sublane constraint; when B > 8 the grid (= Bp // TB) is >= 2 so
    the "parallel" batch axis can be sharded across v7x's two TensorCores.
    """
    batch_tile = max(8, (batch_tile // 8) * 8)
    if B <= 8:
        return 8, 8                       # grid = 1: problem is tiny anyway
    half = _round_up((B + 1) // 2, 8)     # ~half the batch, multiple of 8
    TB = max(8, min(batch_tile, half))
    Bp = _round_up(B, TB)
    return TB, Bp


def _head_attention_kernel(cls_ref, tok_ref, wq_ref, wk_ref, wv_ref, out_ref, *,
                           seq):
    # cls_ref / tok_ref : (TB*S, H)      (activations, compute dtype)
    # wq_ref (pre-scaled by 1/sqrt(D)) / wk_ref / wv_ref : (D, H)
    # out_ref           : (TB, S*D)      (lane-dense packed output, f32)
    S = seq
    D = wq_ref.shape[0]
    rows = cls_ref.shape[0]
    TB = rows // S

    cls2d = cls_ref[...]
    tok2d = tok_ref[...]

    # Projections: plain (TB*S, H) x (D, H)^T MXU matmuls, f32 accumulation.
    # Weights stay in the PyTorch (D, H) layout; contraction on the H axis of
    # both operands, so no wrapper-side or in-kernel transpose is needed.
    dn = (((1,), (1,)), ((), ()))
    q = lax.dot_general(cls2d, wq_ref[...], dn, preferred_element_type=jnp.float32)
    k = lax.dot_general(tok2d, wk_ref[...], dn, preferred_element_type=jnp.float32)
    v = lax.dot_general(cls2d, wv_ref[...], dn, preferred_element_type=jnp.float32)

    # Regroup rows per instance: S == 8 rows map to exactly one 8-sublane tile,
    # so these reshapes are layout no-ops (no cross-(8,128) data movement).
    q = q.reshape(TB, S, D)               # already scaled by 1/sqrt(D)
    k = k.reshape(TB, S, D)
    v = v.reshape(TB, S, D)

    # Per-instance attention scores; contraction on d, no explicit transpose.
    # TODO(synk): if a bundle dump shows the vmatmul slot saturating from TB
    # independent 8x16x8 pushes, restructure as a shared-push block layout.
    scores = jnp.einsum('bqd,bkd->bqk', q, k,
                        preferred_element_type=jnp.float32)      # (TB, S, S)

    # Numerically stable softmax over the key axis.
    m = jnp.max(scores, axis=-1, keepdims=True)
    e = jnp.exp(scores - m)
    denom = jnp.sum(e, axis=-1, keepdims=True)
    attn = e * pl.reciprocal(denom, approx=True)                 # EUP vrcp

    out = jnp.einsum('bqk,bkd->bqd', attn, v,
                     preferred_element_type=jnp.float32)         # (TB, S, D)

    # Packed, lane-dense store (S*D = 128 lanes at the module's sizes).
    out_ref[...] = out.reshape(TB, S * D).astype(out_ref.dtype)


def head_attention(cls_embedding, head_token_embedding, w_q, w_k, w_v, *,
                   batch_tile=256, compute_dtype=jnp.bfloat16):
    """Pallas implementation of HeadAttention.forward (optionally batched).

    Args:
      cls_embedding:        (S, H) or (B, S, H) float32
      head_token_embedding: same shape as cls_embedding
      w_q, w_k, w_v:        (D, H) float32 (PyTorch nn.Linear weight layout)
      batch_tile:           max instances per grid step (rounded to mult. of 8)
      compute_dtype:        dtype for activations/weights fed to the MXU
                            (accumulation & softmax stay float32)
    Returns:
      (S, D) or (B, S, D) float32
    """
    squeeze = cls_embedding.ndim == 2
    if squeeze:
        cls_embedding = cls_embedding[None]
        head_token_embedding = head_token_embedding[None]

    B, S, H = cls_embedding.shape
    D = w_q.shape[0]

    TB, Bp = _choose_tiling(B, batch_tile)
    grid = Bp // TB

    # Fold the 1/sqrt(D) attention scale into W_q.
    scale = 1.0 / (float(D) ** 0.5)
    wq = (w_q.astype(jnp.float32) * scale).astype(compute_dtype)
    wk = w_k.astype(compute_dtype)
    wv = w_v.astype(compute_dtype)

    # Flatten to row blocks in the wrapper (no in-kernel Ref reshapes) and pad
    # the batch.  Zero padding is benign: zero scores -> uniform softmax over
    # zero V rows -> zero output, no NaNs.
    cls2d = cls_embedding.astype(compute_dtype).reshape(B * S, H)
    tok2d = head_token_embedding.astype(compute_dtype).reshape(B * S, H)
    if Bp != B:
        pad_rows = (Bp - B) * S
        cls2d = jnp.pad(cls2d, ((0, pad_rows), (0, 0)))
        tok2d = jnp.pad(tok2d, ((0, pad_rows), (0, 0)))

    kernel = functools.partial(_head_attention_kernel, seq=S)

    out = pl.pallas_call(
        kernel,
        out_shape=jax.ShapeDtypeStruct((Bp, S * D), jnp.float32),
        grid=(grid,),
        in_specs=[
            pl.BlockSpec((TB * S, H), lambda b: (b, 0)),   # cls rows
            pl.BlockSpec((TB * S, H), lambda b: (b, 0)),   # tok rows
            pl.BlockSpec((D, H), lambda b: (0, 0)),        # W_q * scale
            pl.BlockSpec((D, H), lambda b: (0, 0)),        # W_k
            pl.BlockSpec((D, H), lambda b: (0, 0)),        # W_v
        ],
        out_specs=pl.BlockSpec((TB, S * D), lambda b: (b, 0)),
        compiler_params=pltpu.CompilerParams(
            dimension_semantics=("parallel",),
            # Explicit budget so the tile choice is portable to v7x's smaller
            # VMEM (64 MiB physical / 32 MiB scoped default).  At TB=256 the
            # double-buffered inputs + packed outputs + intermediates stay well
            # below this.
            vmem_limit_bytes=32 * 1024 * 1024),
    )(cls2d, tok2d, wq, wk, wv)

    out = out[:B].reshape(B, S, D)
    if squeeze:
        out = out[0]
    return out


def _reference_single(cls_embedding, head_token_embedding, w_q, w_k, w_v):
    """Pure-JAX reference mirroring the PyTorch forward exactly (one instance)."""
    q = cls_embedding @ w_q.T
    k = head_token_embedding @ w_k.T
    v = cls_embedding @ w_v.T
    d = q.shape[-1]
    scores = (q @ k.T) / (d ** 0.5)
    scores = scores.astype(jnp.float32)
    w = jax.nn.softmax(scores, axis=-1)
    return w @ v


if __name__ == "__main__":
    hidden_dim = 32
    head_dim = 16
    seq = 8
    batch = 10          # exercises batch tiling (TB=8, grid=2) and padding (10->16)

    key = jax.random.PRNGKey(0)
    k1, k2, k3, k4, k5 = jax.random.split(key, 5)

    bound = 1.0 / (hidden_dim ** 0.5)
    w_q = jax.random.uniform(k1, (head_dim, hidden_dim), jnp.float32, -bound, bound)
    w_k = jax.random.uniform(k2, (head_dim, hidden_dim), jnp.float32, -bound, bound)
    w_v = jax.random.uniform(k3, (head_dim, hidden_dim), jnp.float32, -bound, bound)

    cls_embedding = jax.random.normal(k4, (batch, seq, hidden_dim), jnp.float32)
    head_token_embedding = jax.random.normal(k5, (batch, seq, hidden_dim), jnp.float32)

    ref_b = jax.vmap(lambda c, t: _reference_single(c, t, w_q, w_k, w_v))(
        cls_embedding, head_token_embedding)

    # Default (bf16 activations/weights, f32 accumulation) batched path.
    out_b = head_attention(cls_embedding, head_token_embedding, w_q, w_k, w_v)
    out_b = jax.block_until_ready(out_b)
    assert out_b.shape == (batch, seq, head_dim)
    # Tolerance covers bf16 operand rounding + approx EUP reciprocal.
    assert jnp.allclose(out_b, ref_b, atol=3e-2, rtol=3e-2), "bf16 batched mismatch"

    # Full-f32 batched path (tight tolerance; only approx reciprocal differs).
    out_b32 = head_attention(cls_embedding, head_token_embedding, w_q, w_k, w_v,
                             compute_dtype=jnp.float32)
    out_b32 = jax.block_until_ready(out_b32)
    assert jnp.allclose(out_b32, ref_b, atol=2e-3, rtol=2e-3), "f32 batched mismatch"

    # Single-instance path (matches the PyTorch module's forward signature).
    out_s = head_attention(cls_embedding[0], head_token_embedding[0], w_q, w_k, w_v,
                           compute_dtype=jnp.float32)
    out_s = jax.block_until_ready(out_s)
    ref_s = _reference_single(cls_embedding[0], head_token_embedding[0], w_q, w_k, w_v)
    assert out_s.shape == (seq, head_dim)
    assert jnp.allclose(out_s, ref_s, atol=2e-3, rtol=2e-3), "single mismatch"

    print("KERNEL_OK")
</pallas_src>

<mosaic_0001>
module attributes {stable_mosaic.version = 11 : i64} {
  func.func @_head_attention_kernel(%arg0: i32, %arg1: memref<64x32xbf16, #tpu.memory_space<vmem>>, %arg2: memref<64x32xbf16, #tpu.memory_space<vmem>>, %arg3: memref<16x32xbf16, #tpu.memory_space<vmem>>, %arg4: memref<16x32xbf16, #tpu.memory_space<vmem>>, %arg5: memref<16x32xbf16, #tpu.memory_space<vmem>>, %arg6: memref<8x128xf32, #tpu.memory_space<vmem>>) attributes {dimension_semantics = [#tpu.dimension_semantics<parallel>], iteration_bounds = array<i64: 2>, scalar_prefetch = 0 : i64, scratch_operands = 0 : i64, tpu.core_type = #tpu.core_type<tc>, window_params = [{transform_indices = @transform_0, window_bounds = array<i64: 64, 32>}, {transform_indices = @transform_1, window_bounds = array<i64: 64, 32>}, {pipeline_mode = #tpu.pipeline_mode<synchronous>, transform_indices = @transform_2, window_bounds = array<i64: 16, 32>}, {pipeline_mode = #tpu.pipeline_mode<synchronous>, transform_indices = @transform_3, window_bounds = array<i64: 16, 32>}, {pipeline_mode = #tpu.pipeline_mode<synchronous>, transform_indices = @transform_4, window_bounds = array<i64: 16, 32>}, {transform_indices = @transform_5, window_bounds = array<i64: 8, 128>}]} {
    %c0 = arith.constant 0 : index
    %c0_0 = arith.constant 0 : index
    %0 = vector.load %arg1[%c0, %c0_0] : memref<64x32xbf16, #tpu.memory_space<vmem>>, vector<64x32xbf16>
    %c0_1 = arith.constant 0 : index
    %c0_2 = arith.constant 0 : index
    %1 = vector.load %arg2[%c0_1, %c0_2] : memref<64x32xbf16, #tpu.memory_space<vmem>>, vector<64x32xbf16>
    %c0_3 = arith.constant 0 : index
    %c0_4 = arith.constant 0 : index
    %2 = vector.load %arg3[%c0_3, %c0_4] : memref<16x32xbf16, #tpu.memory_space<vmem>>, vector<16x32xbf16>
    %cst = arith.constant dense<0.000000e+00> : vector<64x16xf32>
    %3 = tpu.matmul %0, %2, %cst {dimension_numbers = #tpu.dot_dimension_numbers<[1], [1], [0], [0], [0, 0, 1, 0], [], []>} : vector<64x32xbf16>, vector<16x32xbf16>, vector<64x16xf32> -> vector<64x16xf32>
    %c0_5 = arith.constant 0 : index
    %c0_6 = arith.constant 0 : index
    %4 = vector.load %arg4[%c0_5, %c0_6] : memref<16x32xbf16, #tpu.memory_space<vmem>>, vector<16x32xbf16>
    %cst_7 = arith.constant dense<0.000000e+00> : vector<64x16xf32>
    %5 = tpu.matmul %1, %4, %cst_7 {dimension_numbers = #tpu.dot_dimension_numbers<[1], [1], [0], [0], [0, 0, 1, 0], [], []>} : vector<64x32xbf16>, vector<16x32xbf16>, vector<64x16xf32> -> vector<64x16xf32>
    %c0_8 = arith.constant 0 : index
    %c0_9 = arith.constant 0 : index
    %6 = vector.load %arg5[%c0_8, %c0_9] : memref<16x32xbf16, #tpu.memory_space<vmem>>, vector<16x32xbf16>
    %cst_10 = arith.constant dense<0.000000e+00> : vector<64x16xf32>
    %7 = tpu.matmul %0, %6, %cst_10 {dimension_numbers = #tpu.dot_dimension_numbers<[1], [1], [0], [0], [0, 0, 1, 0], [], []>} : vector<64x32xbf16>, vector<16x32xbf16>, vector<64x16xf32> -> vector<64x16xf32>
    %8 = vector.shape_cast %3 : vector<64x16xf32> to vector<8x8x16xf32>
    %9 = vector.shape_cast %5 : vector<64x16xf32> to vector<8x8x16xf32>
    %10 = vector.shape_cast %7 : vector<64x16xf32> to vector<8x8x16xf32>
    "tpu.trace_start"() <{level = 10 : i32, message = "bqd,bkd->bqk"}> : () -> ()
    %cst_11 = arith.constant dense<0.000000e+00> : vector<8x8x8xf32>
    %11 = tpu.matmul %8, %9, %cst_11 {dimension_numbers = #tpu.dot_dimension_numbers<[2], [2], [1], [1], [0, 0, 0, 1, 1, 1], [0], [0]>} : vector<8x8x16xf32>, vector<8x8x16xf32>, vector<8x8x8xf32> -> vector<8x8x8xf32>
    "tpu.trace_stop"() : () -> ()
    %cst_12 = arith.constant dense<0xFF800000> : vector<8x8xf32>
    %12 = vector.multi_reduction <maximumf>, %11, %cst_12 [2] : vector<8x8x8xf32> to vector<8x8xf32>
    %13 = vector.shape_cast %12 : vector<8x8xf32> to vector<8x8x1xf32>
    %14 = vector.broadcast %13 : vector<8x8x1xf32> to vector<8x8x8xf32>
    %15 = arith.subf %11, %14 : vector<8x8x8xf32>
    %16 = math.exp %15 : vector<8x8x8xf32>
    %cst_13 = arith.constant dense<0.000000e+00> : vector<8x8xf32>
    %17 = vector.multi_reduction <add>, %16, %cst_13 [2] : vector<8x8x8xf32> to vector<8x8xf32>
    %18 = vector.shape_cast %17 : vector<8x8xf32> to vector<8x8x1xf32>
    %19 = tpu.reciprocal %18 {approx = true} : vector<8x8x1xf32> -> vector<8x8x1xf32>
    %20 = vector.broadcast %19 : vector<8x8x1xf32> to vector<8x8x8xf32>
    %21 = arith.mulf %16, %20 : vector<8x8x8xf32>
    "tpu.trace_start"() <{level = 10 : i32, message = "bqk,bkd->bqd"}> : () -> ()
    %cst_14 = arith.constant dense<0.000000e+00> : vector<8x8x16xf32>
    %22 = tpu.matmul %21, %10, %cst_14 {dimension_numbers = #tpu.dot_dimension_numbers<[2], [1], [1], [2], [0, 0, 0, 1, 1, 2], [0], [0]>} : vector<8x8x8xf32>, vector<8x8x16xf32>, vector<8x8x16xf32> -> vector<8x8x16xf32>
    "tpu.trace_stop"() : () -> ()
    %23 = vector.shape_cast %22 : vector<8x8x16xf32> to vector<8x128xf32>
    %c0_15 = arith.constant 0 : index
    %c0_16 = arith.constant 0 : index
    %24 = vector.load %arg6[%c0_15, %c0_16] : memref<8x128xf32, #tpu.memory_space<vmem>>, vector<8x128xf32>
    tpu.vector_store %arg6[%c0_15, %c0_16], %23 {strides = array<i32>} : memref<8x128xf32, #tpu.memory_space<vmem>>, vector<8x128xf32>,
    return
  }
  func.func @transform_0(%arg0: i32) -> (i32, i32) {
    %c0_i32 = arith.constant 0 : i32
    %c0_i32_0 = arith.constant 0 : i32
    return %arg0, %c0_i32 : i32, i32
  }
  func.func @transform_1(%arg0: i32) -> (i32, i32) {
    %c0_i32 = arith.constant 0 : i32
    %c0_i32_0 = arith.constant 0 : i32
    return %arg0, %c0_i32 : i32, i32
  }
  func.func @transform_2(%arg0: i32) -> (i32, i32) {
    %c0_i32 = arith.constant 0 : i32
    %c0_i32_0 = arith.constant 0 : i32
    %c0_i32_1 = arith.constant 0 : i32
    return %c0_i32, %c0_i32_0 : i32, i32
  }
  func.func @transform_3(%arg0: i32) -> (i32, i32) {
    %c0_i32 = arith.constant 0 : i32
    %c0_i32_0 = arith.constant 0 : i32
    %c0_i32_1 = arith.constant 0 : i32
    return %c0_i32, %c0_i32_0 : i32, i32
  }
  func.func @transform_4(%arg0: i32) -> (i32, i32) {
    %c0_i32 = arith.constant 0 : i32
    %c0_i32_0 = arith.constant 0 : i32
    %c0_i32_1 = arith.constant 0 : i32
    return %c0_i32, %c0_i32_0 : i32, i32
  }
  func.func @transform_5(%arg0: i32) -> (i32, i32) {
    %c0_i32 = arith.constant 0 : i32
    %c0_i32_0 = arith.constant 0 : i32
    return %arg0, %c0_i32 : i32, i32
  }
}

</mosaic_0001>

<bundles_post_ra>
// kernel: tpu_custom_call.1
= control target key start
LH: loop header
LB: loop body
LE: loop exit
PB: predicated region body
PF: predicated region fallthrough
CT: control target
= control target key end

     0   :  { %10 = vsyncpa [#allocation3], 0  ;;  %s1669_s0 = inlined_call_operand.vmem [shape: bf16[128,32], index: 0, kind: input, shape index: {}]   ;;  %s1670_s1 = inlined_call_operand.vmem [shape: bf16[128,32], index: 1, kind: input, shape index: {}]   ;;  %s1671_s2 = inlined_call_operand.vmem [shape: bf16[16,32], index: 2, kind: input, shape index: {}]   ;;  %s1672_s3 = inlined_call_operand.vmem [shape: bf16[16,32], index: 3, kind: input, shape index: {}]   ;;  %s1673_s4 = inlined_call_operand.vmem [shape: bf16[16,32], index: 4, kind: input, shape index: {}]   ;;  %s1674_s5 = inlined_call_operand.hbm [shape: f32[16,128], index: 5, kind: output, shape index: {}]  }
   0x1   :  { %12 = vsyncpa [#allocation3 + $0x1], 0  ;;  %s1456_s18 = smov 0   ;;  %s1458_s19 = smov 0  }
   0x2   :  { %s1460_s20 = smov 0   ;;  %s1462_s21 = smov 0  }
   0x3 LB: > { %s1168_s22 = sadd.s32 4294967295, %s1415_s21   ;;  %s1169_s23 = sadd.s32 4294967294, %s1415_s21   ;;  %s1415_s21 = sphi %s1462_s21, %s1680_s21   ;;  %s1411_s20 = sphi %s1460_s20, %s1679_s20   ;;  %s1407_s19 = sphi %s1458_s19, %s1678_s19   ;;  %s1403_s18 = sphi %s1456_s18, %s1677_s18  }
   0x4   : > { %s1479_s24 = sadd.s32 1, %s1415_s21   ;;  %s140_s25 = sadd.s32 1, %s1411_s20 }
   0x5   : > { %s137_s26 = ssub.s32 %s1415_s21, %s1479_s24  ;;  %p150_p0 = scmp.ne.s32.totalorder %s1411_s20, %s1407_s19 }
   0x6   : > { %p138_p1 = scmp.eq.s32.totalorder %s137_s26, 0  ;;  %p151_p2 = scmp.eq.s32.totalorder %s1168_s22, 1 }
   0x7   : > { %p156_p3 = scmp.ne.s32.totalorder %s1407_s19, %s1403_s18  ;;  %p157_p4 = scmp.eq.s32.totalorder %s1169_s23, 1 }
   0x8   : > { %s1489_s27 = scalar_select %p138_p1, %s1411_s20, %s140_s25  }
   0x9   : > { %p1491_p5 = por %p151_p2, %p150_p0  ;;  %p1495_p6 = por %p157_p4, %p156_p3 }
   0xa   : > { %p1172_p7 = scmp.ge.s32.totalorder %s1415_s21, 1  ;;  %p202_p8 = scmp.lt.s32.totalorder %s1415_s21, 3 }
   0xc   : > { %p203_p9 = pnand %p1172_p7, %p202_p8 }
   0xd   : > { %s1507_s9 = sshll.u32 (!%p203_p9), %s1168_s22, 3  ;;  %s1419_s25 = smov (!%p203_p9), 16  }
   0xe   : > { %206 = sbr.rel (%p203_p9) target bundleno = 878 (0x36e), region = 40  ;;  %p236_p10 = scmp.lt.s32.totalorder (!%p203_p9), %s1507_s9, 15 }
   0xf   : > { %s1420_s26 = smov (!%p203_p9), 48   ;;  %s1421_s30 = smov (!%p203_p9), 32  }
  0x10   : > { %s1422_s6 = smov (!%p203_p9), 80   ;;  %s1423_s7 = smov (!%p203_p9), 96  }
  0x11   : > { %s1424_s8 = smov (!%p203_p9), 64   ;;  %s1093_s15 = scalar_lea.hbm (!%p203_p9), %s1674_s5, %s1507_s9 }
  0x12   : > { %s1097_s22 = sshll.u32 (!%p203_p9), %s1093_s15, 4  ;;  %s1098_s22 = int_to_ptr.hbm [resolvable:$true] %s1097_s22 }
  0x13   : > { %v1270_v0 = vld [vmem:[%s1671_s2] sm:$0xff]  ;;  %vm291_vm0 = vcmask 261120   ;;  %s237_s10 = scalar_select %p236_p10, %s1507_s9, 15  ;;  %vm446_vm1 = vcmask 130048   ;;  %vm655_vm2 = vcmask 64512   ;;  %vm929_vm3 = vcmask 1047556  }
  0x14   : > { %v1271_v1 = vld [vmem:[%s1672_s3] sm:$0xff]  ;;  %v305_v2 = vsel %vm291_vm0, %v1270_v0, 0  ;;  %vm1071_vm4 = vcmask 392192   ;;  %vm1073_vm5 = vcmask 523264   ;;  %vm1075_vm6 = vcmask 654336  }
  0x15   : > { %v376_v3 = vsel %vm291_vm0, %v1271_v1, 0  ;;  %314 = vmatpush.bf16.xpose.msra.mxu0 %v305_v2  ;;  %s1175_s11 = sshll.u32 %s237_s10, 2  ;;  %v1272_v37 = vld [vmem:[%s1673_s4] sm:$0xff]  ;;  %s1425_s10 = smov 112   ;;  %vm1077_vm7 = vcmask 785408   ;;  %vm1079_vm8 = vcmask 916480  }
  0x16   : > { %385 = vmatpush.bf16.xpose.msra.mxu1 %v376_v3  ;;  %s239_s14 = scalar_lea.vmem %s1669_s0, %s1175_s11  ;;  %s245_s17 = scalar_lea.vmem %s1670_s1, %s1175_s11  ;;  %v415_v38 = vsel %vm291_vm0, %v1272_v37, 0 }
  0x17   : > { %v1519_v4 = vld [vmem:[%s239_s14] sm:$0xff]  ;;  %v1524_v6 = vld [vmem:[%s239_s14 + $0x8] sm:$0xff]  ;;  %v1529_v8 = vld [vmem:[%s239_s14 + $0x10] sm:$0xff]  ;;  %424 = vmatpush.bf16.xpose.msra.mxu2 %v415_v38  ;;  %s232_s11 = sand.u32 1, %s1407_s19  }
  0x18   : > { %v1266_v5 = vld [vmem:[%s245_s17] sm:$0xff]  ;;  %v1267_v7 = vld [vmem:[%s245_s17 + $0x8] sm:$0xff]  ;;  %v1268_v9 = vld [vmem:[%s245_s17 + $0x10] sm:$0xff]  ;;  %s1173_s12 = sshll.u32 %s232_s11, 3  ;;  %s1083_s23 = scalar_lea.sflag [#allocation3], %s232_s11 }
  0x19   : > { %v1534_v10 = vld [vmem:[%s239_s14 + $0x18] sm:$0xff]  ;;  %s234_s16 = scalar_lea.vmem [#allocation2], %s1173_s12 }
  0x1a   : > { %v1269_v11 = vld [vmem:[%s245_s17 + $0x18] sm:$0xff]  ;;  %s1095_s17 = sshll.u32 %s234_s16, 4  ;;  %s1096_s17 = int_to_ptr.vmem [resolvable:$true] %s1095_s17 }
  0x1c   : > { %1198 = vmatmul.msk.bf16.vlgmr.msra.gmra.mxu0 %vm291_vm0, %v1519_v4 }
  0x1d   : > { %1222 = vmatmul.msk.bf16.vlgmr.msra.gmra.mxu1 %vm291_vm0, %v1266_v5 }
  0x1e   : > { %1230 = vmatmul.msk.bf16.vlgmr.msra.gmra.mxu2 %vm291_vm0, %v1519_v4 }
  0x2c   : > { %1199 = vmatmul.msk.bf16.gmra.mxu0 %vm291_vm0, %v1524_v6 }
  0x2d   : > { %1223 = vmatmul.msk.bf16.gmra.mxu1 %vm291_vm0, %v1267_v7 }
  0x2e   : > { %1231 = vmatmul.msk.bf16.gmra.mxu2 %vm291_vm0, %v1524_v6 }
  0x3c   : > { %1200 = vmatmul.msk.bf16.gmra.mxu0 %vm291_vm0, %v1529_v8 }
  0x3d   : > { %1224 = vmatmul.msk.bf16.gmra.mxu1 %vm291_vm0, %v1268_v9 }
  0x3e   : > { %1232 = vmatmul.msk.bf16.gmra.mxu2 %vm291_vm0, %v1529_v8 }
  0x4c   : > { %1201 = vmatmul.msk.bf16.gmra.mxu0 %vm291_vm0, %v1534_v10 }
  0x4d   : > { %1225 = vmatmul.msk.bf16.gmra.mxu1 %vm291_vm0, %v1269_v11 }
  0x4e   : > { %1233 = vmatmul.msk.bf16.gmra.mxu2 %vm291_vm0, %v1534_v10 }
  0x99   : > { %v316_v12 = vpop.f32.mrf.mxu0 }
  0x9a   : > { %v387_v13 = vpop.f32.mrf.mxu1 }
  0x9b   : > { %1234 = vmatpush.xpose.msk.msra.mxu3 %vm446_vm1, %v387_v13 }
  0x9e   : > { %1235 = vmatmul.msk.f32.vlgmr.msra.gmra.mxu3 %vm446_vm1, %v316_v12 }
  0xa1   : > { %v318_v14 = vpop.f32.mrf.mxu0  ;;  %v426_v8 = vpop.f32.mrf.mxu2 }
  0xa2   : > { %v389_v15 = vpop.f32.mrf.mxu1 }
  0xa3   : > { %1236 = vmatpush.xpose.msk.msrb.mxu3 %vm446_vm1, %v389_v15 }
  0xa6   : > { %1237 = vmatmul.msk.f32.vlgmr.msrb.gmra.mxu3 %vm446_vm1, %v318_v14 }
  0xa9   : > { %v321_v16 = vpop.f32.mrf.mxu0 }
  0xaa   : > { %v392_v17 = vpop.f32.mrf.mxu1 }
  0xab   : > { %1238 = vmatpush.xpose.msk.msra.mxu3 %vm446_vm1, %v392_v17 }
  0xae   : > { %1239 = vmatmul.msk.f32.vlgmr.msra.gmra.mxu3 %vm446_vm1, %v321_v16  ;;  %v428_v16 = vpop.f32.mrf.mxu2 }
  0xaf   : > { %785 = vmatpush.msrb.mxu0 %v428_v16 }
  0xb1   : > { %v323_v18 = vpop.f32.mrf.mxu0 }
  0xb2   : > { %v394_v19 = vpop.f32.mrf.mxu1 }
  0xb3   : > { %1240 = vmatpush.xpose.msk.msrb.mxu3 %vm446_vm1, %v394_v19 }
  0xb6   : > { %1241 = vmatmul.msk.f32.vlgmr.msrb.gmra.mxu3 %vm446_vm1, %v323_v18 }
  0xb9   : > { %v326_v20 = vpop.f32.mrf.mxu0 }
  0xba   : > { %v397_v21 = vpop.f32.mrf.mxu1 }
  0xbb   : > { %1242 = vmatpush.xpose.msk.msra.mxu3 %vm446_vm1, %v397_v21  ;;  %v431_v21 = vpop.f32.mrf.mxu2 }
  0xbc   : > { %808 = vmatpush.msrb.mxu1 %v431_v21 }
  0xbe   : > { %1243 = vmatmul.msk.f32.vlgmr.msra.gmra.mxu3 %vm446_vm1, %v326_v20 }
  0xc1   : > { %v328_v22 = vpop.f32.mrf.mxu0 }
  0xc2   : > { %v399_v23 = vpop.f32.mrf.mxu1 }
  0xc3   : > { %1244 = vmatpush.xpose.msk.msrb.mxu3 %vm446_vm1, %v399_v23 }
  0xc6   : > { %1245 = vmatmul.msk.f32.vlgmr.msrb.gmra.mxu3 %vm446_vm1, %v328_v22 }
  0xc9   : > { %v331_v25 = vpop.f32.mrf.mxu0 }
  0xca   : > { %v402_v24 = vpop.f32.mrf.mxu1 }
  0xcb   : > { %1246 = vmatpush.xpose.msk.msra.mxu3 %vm446_vm1, %v402_v24 }
  0xce   : > { %1247 = vmatmul.msk.f32.vlgmr.msra.gmra.mxu3 %vm446_vm1, %v331_v25  ;;  %v433_v25 = vpop.f32.mrf.mxu2 }
  0xcf   : > { %831 = vmatpush.msrb.mxu2 %v433_v25 }
  0xd1   : > { %v333_v27 = vpop.f32.mrf.mxu0 }
  0xd2   : > { %v404_v26 = vpop.f32.mrf.mxu1 }
  0xd3   : > { %1248 = vmatpush.xpose.msk.msrb.mxu3 %vm446_vm1, %v404_v26 }
  0xd6   : > { %1249 = vmatmul.msk.f32.vlgmr.msrb.gmra.mxu3 %vm446_vm1, %v333_v27  ;;  %v436_v26 = vpop.f32.mrf.mxu2 }
  0xd7   : > { %762 = vmatpush.msra.mxu3 %v426_v8 }
  0xd9   : > { %854 = vmatpush.msrb.mxu3 %v436_v26 }
  0xde   : > { %v438_v27 = vpop.f32.mrf.mxu2 }
  0xdf   : > { %877 = vmatpush.msra.mxu0 %v438_v27 }
 0x121   : > { %v470_v28 = vpop.f32.mrf.mxu3 }
 0x122   : > { %v656_v36 = vsel %vm655_vm2, %v470_v28, -inf }
 0x129   : > { %v496_v29 = vpop.f32.mrf.mxu3 }
 0x12a   : > { %v659_v33 = vsel %vm655_vm2, %v496_v29, -inf }
 0x131   : > { %v522_v30 = vpop.f32.mrf.mxu3 }
 0x132   : > { %v662_v31 = vsel %vm655_vm2, %v522_v30, -inf }
 0x133   : > { %663 = vmax.xlane.f32.xlu1 %v662_v31 }
 0x139   : > { %v548_v32 = vpop.f32.mrf.mxu3 }
 0x13a   : > { %v665_v34 = vsel %vm655_vm2, %v548_v32, -inf }
 0x13b   : > { %660 = vmax.xlane.f32.xlu1 %v659_v33  ;;  %666 = vmax.xlane.f32.xlu0 %v665_v34 }
 0x141   : > { %v1558_v35 = vpop.f32.mrf.mxu3 }
 0x142   : > { %v668_v45 = vsel %vm655_vm2, %v1558_v35, -inf }
 0x143   : > { %657 = vmax.xlane.f32.xlu0 %v656_v36 }
 0x149   : > { %v600_v39 = vpop.f32.mrf.mxu3 }
 0x14a   : > { %v671_v40 = vsel %vm655_vm2, %v600_v39, -inf }
 0x14b   : > { %672 = vmax.xlane.f32.xlu1 %v671_v40 }
 0x151   : > { %v626_v41 = vpop.f32.mrf.mxu3 }
 0x152   : > { %v674_v42 = vsel %vm655_vm2, %v626_v41, -inf }
 0x153   : > { %675 = vmax.xlane.f32.xlu0 %v674_v42 }
 0x159   : > { %v652_v43 = vpop.f32.mrf.mxu3 }
 0x15a   : > { %v677_v44 = vsel %vm655_vm2, %v652_v43, -inf }
 0x15b   : > { %678 = vmax.xlane.f32.xlu2 %v677_v44 }
 0x163   : > { %669 = vmax.xlane.f32.xlu2 %v668_v45 }
 0x1a6   : > { %v664_v46 = vpop.xlane.xlu1 %663 }
 0x1a7   : > { %v682_v47 = vsub.f32 %v522_v30, %v664_v46 }
 0x1a9   : > { %v692_v48 = vmul.f32 1.442695, %v682_v47 }
 0x1ab   : > { %1321 = vpow2.f32 %v692_v48 }
 0x1ae   : > { %v667_v49 = vpop.xlane.xlu0 %666  ;;  %v661_v50 = vpop.xlane.xlu1 %660 }
 0x1af   : > { %v683_v51 = vsub.f32 %v548_v32, %v667_v49  ;;  %v681_v54 = vsub.f32 %v496_v29, %v661_v50  ;;  %v441_v29 = vpop.f32.mrf.mxu2 }
 0x1b0   : > { %900 = vmatpush.msra.mxu1 %v441_v29 }
 0x1b1   : > { %v1578_v52 = vpop.eup %1321  ;;  %v694_v53 = vmul.f32 1.442695, %v683_v51  ;;  %v690_v56 = vmul.f32 1.442695, %v681_v54 }
 0x1b2   : > { %v710_v55 = vsel %vm655_vm2, %v1578_v52, 0.0 }
 0x1b3   : > { %711 = vadd.xlane.f32.xlu1 %v710_v55  ;;  %1323 = vpow2.f32 %v694_v53 }
 0x1b4   : > { %1325 = vpow2.f32 %v690_v56  ;;  %v1417_v56 = vmov 1983009808  }
 0x1b6   : > { %v658_v57 = vpop.xlane.xlu0 %657 }
 0x1b7   : > { %v680_v58 = vsub.f32 %v470_v28, %v658_v57  ;;  %v443_v33 = vpop.f32.mrf.mxu2  ;;  %v934_v57 = vunpack.c.l.s4 %v1417_v56 }
 0x1b8   : > { %923 = vmatpush.msra.mxu2 %v443_v33 }
 0x1b9   : > { %v688_v59 = vmul.f32 1.442695, %v680_v58  ;;  %v1582_v60 = vpop.eup %1323 }
 0x1ba   : > { %v713_v61 = vsel %vm655_vm2, %v1582_v60, 0.0  ;;  %v1586_v62 = vpop.eup %1325 }
 0x1bb   : > { %1327 = vpow2.f32 %v688_v59  ;;  %714 = vadd.xlane.f32.xlu2 %v713_v61  ;;  %v707_v1 = vsel %vm655_vm2, %v1586_v62, 0.0 }
 0x1be   : > { %v673_v5 = vpop.xlane.xlu1 %672 }
 0x1bf   : > { %v685_v10 = vsub.f32 %v600_v39, %v673_v5 }
 0x1c1   : > { %v1588_v63 = vpop.eup %1327  ;;  %v698_v13 = vmul.f32 1.442695, %v685_v10 }
 0x1c2   : > { %v704_v0 = vsel %vm655_vm2, %v1588_v63, 0.0 }
 0x1c3   : > { %705 = vadd.xlane.f32.xlu0 %v704_v0  ;;  %708 = vadd.xlane.f32.xlu2 %v707_v1 }
 0x1c6   : > { %v676_v2 = vpop.xlane.xlu0 %675 }
 0x1c7   : > { %v686_v3 = vsub.f32 %v626_v41, %v676_v2 }
 0x1c9   : > { %v700_v4 = vmul.f32 1.442695, %v686_v3 }
 0x1cb   : > { %1329 = vpow2.f32 %v700_v4 }
 0x1ce   : > { %v679_v6 = vpop.xlane.xlu2 %678 }
 0x1cf   : > { %v687_v7 = vsub.f32 %v652_v43, %v679_v6 }
 0x1d1   : > { %v1330_v9 = vpop.eup %1329  ;;  %v702_v11 = vmul.f32 1.442695, %v687_v7  ;;  %v1418_v7 = vmov 1934713408  }
 0x1d2   : > { %v722_v12 = vsel %vm655_vm2, %v1330_v9, 0.0  ;;  %v982_v8 = vunpack.c.l.s4 %v1418_v7 }
 0x1d3   : > { %1331 = vpow2.f32 %v702_v11  ;;  %723 = vadd.xlane.f32.xlu2 %v722_v12 }
 0x1d4   : > { %1333 = vpow2.f32 %v698_v13  ;;  %v983_v16 = vunpack.c.0.s8 %v982_v8 }
 0x1d6   : > { %v670_v14 = vpop.xlane.xlu2 %669 }
 0x1d7   : > { %v684_v15 = vsub.f32 %v1558_v35, %v670_v14 }
 0x1d9   : > { %v1332_v17 = vpop.eup %1331  ;;  %v696_v18 = vmul.f32 1.442695, %v684_v15 }
 0x1da   : > { %v725_v19 = vsel %vm655_vm2, %v1332_v17, 0.0  ;;  %v1334_v20 = vpop.eup %1333 }
 0x1db   : > { %1335 = vpow2.f32 %v696_v18  ;;  %726 = vadd.xlane.f32.xlu0 %v725_v19  ;;  %v719_v23 = vsel %vm655_vm2, %v1334_v20, 0.0 }
 0x1e1   : > { %v1336_v22 = vpop.eup %1335 }
 0x1e2   : > { %v716_v24 = vsel %vm655_vm2, %v1336_v22, 0.0 }
 0x1e3   : > { %720 = vadd.xlane.f32.xlu0 %v719_v23  ;;  %717 = vadd.xlane.f32.xlu1 %v716_v24 }
 0x226   : > { %v712_v28 = vpop.xlane.xlu1 %711 }
 0x227   : > { %1337 = vrcp.f32 %v712_v28 }
 0x22d   : > { %v1338_v30 = vpop.eup %1337 }
 0x22e   : > { %v738_v31 = vmul.f32 %v1338_v30, %v1578_v52  ;;  %v715_v32 = vpop.xlane.xlu2 %714 }
 0x22f   : > { %1339 = vrcp.f32 %v715_v32 }
 0x230   : > { %1252 = vmatmul.msk.f32.vlgmr.msrb.gmra.mxu1 %vm655_vm2, %v738_v31 }
 0x235   : > { %v1340_v34 = vpop.eup %1339 }
 0x236   : > { %v706_v35 = vpop.xlane.xlu0 %705  ;;  %v709_v36 = vpop.xlane.xlu2 %708  ;;  %v739_v37 = vmul.f32 %v1340_v34, %v1582_v60 }
 0x237   : > { %1341 = vrcp.f32 %v706_v35 }
 0x238   : > { %1343 = vrcp.f32 %v709_v36  ;;  %1253 = vmatmul.msk.f32.vlgmr.msrb.gmra.mxu2 %vm655_vm2, %v739_v37 }
 0x23d   : > { %v1342_v38 = vpop.eup %1341 }
 0x23e   : > { %v1344_v39 = vpop.eup %1343  ;;  %v736_v40 = vmul.f32 %v1342_v38, %v1588_v63 }
 0x23f   : > { %v737_v41 = vmul.f32 %v1344_v39, %v1586_v62  ;;  %v935_v62 = vunpack.c.0.s8 %v934_v57 }
 0x240   : > { %1250 = vmatmul.msk.f32.vlgmr.msra.gmra.mxu3 %vm655_vm2, %v736_v40 }
 0x241   : > { %1251 = vmatmul.msk.f32.vlgmr.msrb.gmra.mxu0 %vm655_vm2, %v737_v41 }
 0x246   : > { %v724_v42 = vpop.xlane.xlu2 %723 }
 0x247   : > { %1345 = vrcp.f32 %v724_v42 }
 0x24d   : > { %v1346_v43 = vpop.eup %1345 }
 0x24e   : > { %v742_v44 = vmul.f32 %v1346_v43, %v1330_v9  ;;  %v727_v45 = vpop.xlane.xlu0 %726 }
 0x24f   : > { %1347 = vrcp.f32 %v727_v45 }
 0x250   : > { %1256 = vmatmul.msk.f32.vlgmr.msra.gmra.mxu1 %vm655_vm2, %v742_v44 }
 0x255   : > { %v1348_v46 = vpop.eup %1347 }
 0x256   : > { %v743_v47 = vmul.f32 %v1348_v46, %v1332_v17  ;;  %v721_v48 = vpop.xlane.xlu0 %720  ;;  %v718_v49 = vpop.xlane.xlu1 %717 }
 0x257   : > { %1349 = vrcp.f32 %v721_v48 }
 0x258   : > { %1351 = vrcp.f32 %v718_v49  ;;  %1257 = vmatmul.msk.f32.vlgmr.msra.gmra.mxu2 %vm655_vm2, %v743_v47 }
 0x25d   : > { %v1350_v50 = vpop.eup %1349 }
 0x25e   : > { %v1352_v51 = vpop.eup %1351  ;;  %v741_v52 = vmul.f32 %v1350_v50, %v1334_v20 }
 0x25f   : > { %v740_v53 = vmul.f32 %v1352_v51, %v1336_v22 }
 0x260   : > { %1255 = vmatmul.msk.f32.vlgmr.msra.gmra.mxu0 %vm655_vm2, %v741_v52 }
 0x261   : > { %1254 = vmatmul.msk.f32.vlgmr.msrb.gmra.mxu3 %vm655_vm2, %v740_v53 }
 0x2ad   : > { %v810_v55 = vpop.f32.mrf.mxu1 }
 0x2ae   : > { %v928_v61 = vrot.slane %v810_v55, 4 }
 0x2bb   : > { %v833_v54 = vpop.f32.mrf.mxu2 }
 0x2bc   : > { %v941_v58 = vrot.slane %v833_v54, 4 }
 0x2be   : > { %v787_v59 = vpop.f32.mrf.mxu0 }
 0x2bf   : > { %v942_v63 = vsel %vm929_vm3, %v941_v58, %v787_v59  ;;  %v943_v5 = vrot.slane %v787_v59, 4 }
 0x2c0   : > { %v948_v2 = vperm.slane %v942_v63, %v935_v62 }
 0x2c1   : > { %v944_v15 = vsel %vm929_vm3, %v833_v54, %v943_v5 }
 0x2c2   : > { %v977_v12 = vrot.slane %v948_v2, 4  ;;  %v952_v22 = vperm.slane %v944_v15, %v935_v62 }
 0x2c3   : > { %v764_v60 = vpop.f32.mrf.mxu3 }
 0x2c4   : > { %v930_v0 = vsel %vm929_vm3, %v928_v61, %v764_v60  ;;  %v931_v9 = vrot.slane %v764_v60, 4  ;;  %v989_v34 = vrot.slane %v952_v22, 4 }
 0x2c5   : > { %v936_v3 = vperm.slane %v930_v0, %v935_v62 }
 0x2c6   : > { %v932_v19 = vsel %vm929_vm3, %v810_v55, %v931_v9 }
 0x2c7   : > { %v979_v13 = vrot.slane %v936_v3, 4  ;;  %v978_v17 = vsel %vm929_vm3, %v977_v12, %v936_v3  ;;  %v940_v28 = vperm.slane %v932_v19, %v935_v62 }
 0x2c8   : > { %v984_v27 = vperm.slane %v978_v17, %v983_v16 }
 0x2c9   : > { %v980_v24 = vsel %vm929_vm3, %v948_v2, %v979_v13  ;;  %v990_v43 = vsel %vm929_vm3, %v989_v34, %v940_v28  ;;  %v991_v48 = vrot.slane %v940_v28, 4 }
 0x2ca   : > { %v988_v33 = vperm.slane %v980_v24, %v983_v16  ;;  %v1027_v39 = vrot.slane %v984_v27, 4  ;;  %v996_v53 = vperm.slane %v990_v43, %v983_v16 }
 0x2cb   : > { %v992_v58 = vsel %vm929_vm3, %v952_v22, %v991_v48 }
 0x2cc   : > { %v1031_v47 = vrot.slane %v988_v33, 4  ;;  %v1035_v59 = vrot.slane %v996_v53, 4 }
 0x2cd   : > { %v902_v14 = vpop.f32.mrf.mxu1 }
 0x2ce   : > { %v953_v20 = vrot.slane %v902_v14, 4 }
 0x2db   : > { %v925_v1 = vpop.f32.mrf.mxu2 }
 0x2dc   : > { %v965_v4 = vrot.slane %v925_v1, 4 }
 0x2dd   : > { %v879_v6 = vpop.f32.mrf.mxu0 }
 0x2de   : > { %v966_v10 = vsel %vm929_vm3, %v965_v4, %v879_v6  ;;  %v967_v11 = vrot.slane %v879_v6, 4 }
 0x2df   : > { %v972_v18 = vperm.slane %v966_v10, %v935_v62 }
 0x2e0   : > { %v968_v21 = vsel %vm929_vm3, %v925_v1, %v967_v11 }
 0x2e1   : > { %v976_v29 = vperm.slane %v968_v21, %v935_v62  ;;  %v1001_v30 = vrot.slane %v972_v18, 4 }
 0x2e3   : > { %v1013_v40 = vrot.slane %v976_v29, 4 }
 0x2e4   : > { %v856_v23 = vpop.f32.mrf.mxu3 }
 0x2e5   : > { %v954_v25 = vsel %vm929_vm3, %v953_v20, %v856_v23  ;;  %v955_v26 = vrot.slane %v856_v23, 4 }
 0x2e6   : > { %v960_v31 = vperm.slane %v954_v25, %v935_v62 }
 0x2e7   : > { %v956_v32 = vsel %vm929_vm3, %v902_v14, %v955_v26 }
 0x2e8   : > { %v964_v35 = vperm.slane %v956_v32, %v935_v62  ;;  %v1003_v36 = vrot.slane %v960_v31, 4  ;;  %v1002_v37 = vsel %vm929_vm3, %v1001_v30, %v960_v31  ;;  %v1000_v62 = vperm.slane %v992_v58, %v983_v16 }
 0x2e9   : > { %v1008_v38 = vperm.slane %v1002_v37, %v983_v16 }
 0x2ea   : > { %v1015_v41 = vrot.slane %v964_v35, 4  ;;  %v1004_v42 = vsel %vm929_vm3, %v972_v18, %v1003_v36  ;;  %v1014_v49 = vsel %vm929_vm3, %v1013_v40, %v964_v35  ;;  %v1039_v2 = vrot.slane %v1000_v62, 4 }
 0x2eb   : > { %v1028_v44 = vsel %vm929_vm3, %v1008_v38, %v1027_v39  ;;  %v1025_v45 = vrot.slane %v1008_v38, 4  ;;  %v1012_v46 = vperm.slane %v1004_v42, %v983_v16  ;;  %v1020_v57 = vperm.slane %v1014_v49, %v983_v16 }
 0x2ec   : > { %1042 = vrot.lane.b32.xlu1 %v1028_v44, %s1419_s25  ;;  %v1016_v50 = vsel %vm929_vm3, %v976_v29, %v1015_v41  ;;  %s1367_s25 = sshra.s32 %s1098_s22, 4  ;;  %s1368_s25 = int_to_ptr.hbm [resolvable:$true] %s1367_s25 }
 0x2ed   : > { %v1032_v51 = vsel %vm929_vm3, %v1012_v46, %v1031_v47  ;;  %v1029_v52 = vrot.slane %v1012_v46, 4  ;;  %v1024_v54 = vperm.slane %v1016_v50, %v983_v16  ;;  %v1026_v55 = vsel %vm929_vm3, %v1025_v45, %v984_v27  ;;  %s1369_s9 = scalar_lea.hbm %s1368_s25, 8  ;;  %p1374_p0 = scmp.lt.s32.totalorder %s1368_s25, %s1674_s5 }
 0x2ee   : > { %1050 = vrot.lane.b32.xlu0 %v1032_v51, %s1420_s26  ;;  %v1036_v61 = vsel %vm929_vm3, %v1020_v57, %v1035_v59  ;;  %v1033_v63 = vrot.slane %v1020_v57, 4  ;;  %p1370_p11 = scmp.ne.s32.totalorder %s1368_s25, %s1369_s9 }
 0x2ef   : > { %v1030_v56 = vsel %vm929_vm3, %v1029_v52, %v988_v33  ;;  %v1037_v60 = vrot.slane %v1024_v54, 4  ;;  %v1040_v3 = vsel %vm929_vm3, %v1024_v54, %v1039_v2 }
 0x2f0   : > { %1046 = vrot.lane.b32.xlu2 %v1030_v56, %s1421_s30  ;;  %v1034_v1 = vsel %vm929_vm3, %v1033_v63, %v996_v53  ;;  %p1371_p12 = pnand %p1370_p11, %p1491_p5 }
 0x2f1   : > { %v1038_v0 = vsel %vm929_vm3, %v1037_v60, %v1000_v62 }
 0x2f2   : > { %p1372_p13 = pneg %p1371_p12 }
 0x2f4   : > { %1058 = vrot.lane.b32.xlu1 %v1036_v61, %s1422_s6  ;;  %s1373_s6 = scalar_lea.hbm %s1674_s5, 16 }
 0x2f5   : > { %p1375_p1 = scmp.lt.s32.totalorder %s1373_s6, %s1369_s9 }
 0x2f6   : > { %1062 = vrot.lane.b32.xlu0 %v1038_v0, %s1423_s7 }
 0x2f7   : > { %p1376_p2 = por %p1375_p1, %p1374_p0 }
 0x2f8   : > { %1054 = vrot.lane.b32.xlu2 %v1034_v1, %s1424_s8 }
 0x2f9   : > { %p1377_p3 = pnand %p1376_p2, %p1372_p13 }
 0x300   : > { %1066 = vrot.lane.b32.xlu2 %v1040_v3, %s1425_s10 }
 0x34a   : > { %v1047_v4 = vpop.permute.xlu2 %1046 }
 0x352   : > { %v1055_v6 = vpop.permute.xlu2 %1054 }
 0x35a   : > { %v1067_v15 = vpop.permute.xlu2 %1066 }
 0x35e   : > { %v1043_v5 = vpop.permute.xlu1 %1042 }
 0x35f   : > { %v1069_v7 = vsel %vm446_vm1, %v1026_v55, %v1043_v5 }
 0x360   : > { %v1051_v8 = vpop.permute.xlu0 %1050  ;;  %v1070_v9 = vsel %vm291_vm0, %v1069_v7, %v1047_v4 }
 0x361   : > { %v1072_v10 = vsel %vm1071_vm4, %v1070_v9, %v1051_v8 }
 0x362   : > { %v1074_v12 = vsel %vm1073_vm5, %v1072_v10, %v1055_v6 }
 0x366   : > { %v1059_v11 = vpop.permute.xlu1 %1058 }
 0x367   : > { %v1076_v13 = vsel %vm1075_vm6, %v1074_v12, %v1059_v11 }
 0x368   : > { %v1063_v14 = vpop.permute.xlu0 %1062 }
 0x369   : > { %v1078_v16 = vsel %vm1077_vm7, %v1076_v13, %v1063_v14 }
 0x36a   : > { %v1080_v17 = vsel %vm1079_vm8, %v1078_v16, %v1067_v15 }
 0x36b   : > { %1081 = vst [vmem:[%s234_s16] sm:$0xff] %v1080_v17 }
 0x36c   : > { %1380 = shalt.err (!%p1377_p3)
}
 0x36d   : > { %1273 = dma.vmem_to_hbm [thread:$0]  (%p1491_p5), %s1096_s17, 128, %s1098_s22, %s1083_s23  }
 0x36e PF: > { %p1279_p4 = scmp.ge.s32.totalorder %s1415_s21, 2  ;;  %s1109_s10 = sand.u32 1, %s1403_s18  }
 0x36f   : > { %s1110_s11 = scalar_lea.sflag [#allocation3], %s1109_s10 }
 0x370   : > { %p1276_p7 = pnand %p1279_p4, %p1495_p6 }
 0x372   : > { %p1277_p8 = pneg %p1276_p7 }
 0x374   : > { %1398 = dma.done.wait (%p1277_p8), %s1110_s11, 128  }
 0x375   : > { %1400 = vsyncadd (%p1277_p8), %s1110_s11, 4294967168  ;;  %p15_p9 = scmp.ge.s32.totalorder %s1479_s24, 4   ;;  %s1677_s18 = smov %s1407_s19 }
 0x376   : > { %s1678_s19 = smov %s1411_s20  ;;  %s1679_s20 = smov %s1489_s27 }
 0x377   : > { %s1680_s21 = smov %s1479_s24  ;;  %17 = sbr.rel (!%p15_p9) target bundleno = 3 (0x3), region = 78 }
 0x37c   :  { %1116 = vsyncpa [#allocation3], 1 }
 0x37d   :  { %1118 = vsyncpa [#allocation3 + $0x1], 1 }

</bundles_post_ra>
